<compile_context>
chip_gen: v5e
topology: v5e:2x2
jax: 0.10.0
libtpu: 0.0.40
codegen_flags: <defaults>
</compile_context>

<pallas_src>
import jax
import jax.numpy as jnp
from jax.experimental import pallas as pl
from jax.experimental.pallas import tpu as pltpu

LANES = 128
SUBLANES = 8
MAX_TILE_ROWS = 2048   # 2048 x 128 x 4B = 1 MiB per f32 input tile
NUM_CORES = 2          # v7x megacore split; harmless on single-TC v5e/v6e


def _make_wmse_kernel(non_zero_weight, rows, tile_rows, tiles_per_core, needs_mask):
    """Builds the kernel. out_ref is an (8, LANES) f32 per-core accumulator block."""

    def kernel(pred_ref, tgt_ref, out_ref):
        c = pl.program_id(0)   # core / parallel axis
        i = pl.program_id(1)   # reduction axis

        @pl.when(i == 0)
        def _():
            out_ref[...] = jnp.zeros_like(out_ref)

        p = pred_ref[...].astype(jnp.float32)
        t = tgt_ref[...].astype(jnp.float32)
        w = jnp.where(t != 0.0, jnp.float32(non_zero_weight), jnp.float32(1.0))
        diff = p - t
        val = w * diff * diff

        if needs_mask:
            # Logical tile index (NOT the clamped DMA block index): rows past
            # `rows` (partial last tile or a fully-overshooting tile on the
            # second core) must contribute nothing.
            tile_idx = c * tiles_per_core + i
            valid_rows = rows - tile_idx * tile_rows
            row_ids = jax.lax.broadcasted_iota(jnp.int32, (tile_rows, LANES), 0)
            val = jnp.where(row_ids < valid_rows, val, jnp.float32(0.0))

        # Fold (tile_rows, 128) -> (8, 128) with pure VPU adds; keeps the hot
        # loop off the scalar path and avoids per-step cross-lane reduces.
        out_ref[...] += jnp.sum(
            val.reshape(tile_rows // SUBLANES, SUBLANES, LANES), axis=0
        )

    return kernel


def weighted_mse_loss(predictions, targets, zero_fraction: float = 0.9, *,
                      max_tile_rows: int = MAX_TILE_ROWS,
                      num_cores: int = NUM_CORES):
    if not 0.0 < zero_fraction < 1.0:
        raise ValueError("zero_fraction must be between 0 and 1.")
    assert predictions.shape == targets.shape
    assert max_tile_rows % SUBLANES == 0

    non_zero_weight = float(zero_fraction / (1.0 - zero_fraction))
    n_elems = predictions.size

    # Flatten in native dtype (kernel casts per tile).
    p_flat = predictions.reshape(-1)
    t_flat = targets.reshape(-1)

    # Minimal pad (< 1024 elements, skipped when already aligned) so the flat
    # array reshapes to a lane-dense [rows, 128] slab with rows % 8 == 0.
    # Padded elements are pred=tgt=0 -> weight 1 * diff 0 = 0 contribution.
    granule = SUBLANES * LANES
    padded_len = pl.cdiv(n_elems, granule) * granule
    pad = padded_len - n_elems
    if pad > 0:
        p_flat = jnp.pad(p_flat, (0, pad))
        t_flat = jnp.pad(t_flat, (0, pad))

    rows = padded_len // LANES
    p2d = p_flat.reshape(rows, LANES)
    t2d = t_flat.reshape(rows, LANES)

    tile_rows = min(max_tile_rows, rows)           # multiple of 8 by construction
    num_tiles = pl.cdiv(rows, tile_rows)
    n_cores = num_cores if num_tiles >= num_cores else 1
    tiles_per_core = pl.cdiv(num_tiles, n_cores)

    # Do the logical tiles cover exactly `rows`? If not, mask the tail in-kernel.
    needs_mask = (n_cores * tiles_per_core * tile_rows) != rows
    last_block = num_tiles - 1

    if needs_mask:
        def in_map(c, i):
            # Clamp so no DMA block is fully out of bounds; the in-kernel mask
            # (computed from the *unclamped* logical tile index) zeroes any
            # re-read / out-of-range rows.
            return (jnp.minimum(c * tiles_per_core + i, last_block), 0)
    else:
        def in_map(c, i):
            return (c * tiles_per_core + i, 0)

    kernel = _make_wmse_kernel(
        non_zero_weight, rows, tile_rows, tiles_per_core, needs_mask
    )

    in_bytes = n_elems * (predictions.dtype.itemsize + targets.dtype.itemsize)
    cost = pl.CostEstimate(
        flops=int(5 * n_elems),
        transcendentals=0,
        bytes_accessed=int(in_bytes + n_cores * SUBLANES * LANES * 4),
    )

    partials = pl.pallas_call(
        kernel,
        out_shape=jax.ShapeDtypeStruct((n_cores * SUBLANES, LANES), jnp.float32),
        grid_spec=pltpu.PrefetchScalarGridSpec(
            num_scalar_prefetch=0,
            grid=(n_cores, tiles_per_core),
            in_specs=[
                pl.BlockSpec((tile_rows, LANES), in_map),
                pl.BlockSpec((tile_rows, LANES), in_map),
            ],
            out_specs=pl.BlockSpec((SUBLANES, LANES), lambda c, i: (c, 0)),
        ),
        compiler_params=pltpu.CompilerParams(
            dimension_semantics=("parallel", "arbitrary"),
        ),
        cost_estimate=cost,
    )(p2d, t2d)

    total = jnp.sum(partials)
    return (total / jnp.float32(n_elems)).astype(jnp.float32)


def weighted_mse_loss_ref(predictions, targets, zero_fraction: float = 0.9):
    non_zero_weight = zero_fraction / (1.0 - zero_fraction)
    w = jnp.where(targets != 0, non_zero_weight, 1.0).astype(jnp.float32)
    loss = w * (predictions.astype(jnp.float32) - targets.astype(jnp.float32)) ** 2
    return loss.mean()


if __name__ == "__main__":
    key = jax.random.PRNGKey(0)
    k1, k2, k3 = jax.random.split(key, 3)

    # NCHW-style small inputs: batch=2, channels=4, spatial=16x16
    shape = (2, 4, 16, 16)
    predictions = jax.random.normal(k1, shape, dtype=jnp.float32)
    targets = jax.random.normal(k2, shape, dtype=jnp.float32)
    # Make ~90% of targets exactly zero (matches zero_fraction=0.9 semantics).
    mask = jax.random.uniform(k3, shape) < 0.9
    targets = jnp.where(mask, 0.0, targets)

    out = jax.block_until_ready(weighted_mse_loss(predictions, targets, 0.9))
    ref = weighted_mse_loss_ref(predictions, targets, 0.9)
    assert jnp.allclose(out, ref, rtol=1e-5, atol=1e-6), (out, ref)

    # Extra coverage of the tail-mask / two-core split / clamped-block paths,
    # using a small max_tile_rows so the grid has multiple (uneven) tiles.
    shape2 = (2, 4, 16, 24)  # 3072 elements -> 24 rows of 128 lanes
    k4, k5, k6 = jax.random.split(jax.random.PRNGKey(1), 3)
    p2 = jax.random.normal(k4, shape2, dtype=jnp.float32)
    t2 = jax.random.normal(k5, shape2, dtype=jnp.float32)
    t2 = jnp.where(jax.random.uniform(k6, shape2) < 0.9, 0.0, t2)
    ref2 = weighted_mse_loss_ref(p2, t2, 0.9)

    out2 = jax.block_until_ready(weighted_mse_loss(p2, t2, 0.9, max_tile_rows=16))
    assert jnp.allclose(out2, ref2, rtol=1e-5, atol=1e-6), (out2, ref2)

    out3 = jax.block_until_ready(weighted_mse_loss(p2, t2, 0.9, max_tile_rows=8))
    assert jnp.allclose(out3, ref2, rtol=1e-5, atol=1e-6), (out3, ref2)

    print("KERNEL_OK")
</pallas_src>

<mosaic_0001>
module attributes {stable_mosaic.version = 11 : i64} {
  func.func @kernel(%arg0: i32, %arg1: i32, %arg2: memref<16x128xf32, #tpu.memory_space<vmem>>, %arg3: memref<16x128xf32, #tpu.memory_space<vmem>>, %arg4: memref<8x128xf32, #tpu.memory_space<vmem>>) attributes {dimension_semantics = [#tpu.dimension_semantics<parallel>, #tpu.dimension_semantics<arbitrary>], iteration_bounds = array<i64: 1, 1>, scalar_prefetch = 0 : i64, scratch_operands = 0 : i64, tpu.core_type = #tpu.core_type<tc>, window_params = [{transform_indices = @transform_0, window_bounds = array<i64: 16, 128>}, {transform_indices = @transform_1, window_bounds = array<i64: 16, 128>}, {transform_indices = @transform_2, window_bounds = array<i64: 8, 128>}]} {
    %c0_i32 = arith.constant 0 : i32
    %0 = arith.cmpi eq, %arg1, %c0_i32 : i32
    %1 = arith.extui %0 : i1 to i32
    %c0_i32_0 = arith.constant 0 : i32
    %2 = arith.cmpi ne, %1, %c0_i32_0 : i32
    scf.if %2 {
      %cst_11 = arith.constant 0.000000e+00 : f32
      %18 = vector.broadcast %cst_11 : f32 to vector<8x128xf32>
      %c0_12 = arith.constant 0 : index
      %c0_13 = arith.constant 0 : index
      %19 = vector.load %arg4[%c0_12, %c0_13] : memref<8x128xf32, #tpu.memory_space<vmem>>, vector<8x128xf32>
      tpu.vector_store %arg4[%c0_12, %c0_13], %18 {strides = array<i32>} : memref<8x128xf32, #tpu.memory_space<vmem>>, vector<8x128xf32>,
    } else {
    }
    %c0 = arith.constant 0 : index
    %c0_1 = arith.constant 0 : index
    %3 = vector.load %arg2[%c0, %c0_1] : memref<16x128xf32, #tpu.memory_space<vmem>>, vector<16x128xf32>
    %c0_2 = arith.constant 0 : index
    %c0_3 = arith.constant 0 : index
    %4 = vector.load %arg3[%c0_2, %c0_3] : memref<16x128xf32, #tpu.memory_space<vmem>>, vector<16x128xf32>
    %cst = arith.constant 0.000000e+00 : f32
    %5 = vector.broadcast %cst : f32 to vector<16x128xf32>
    %6 = arith.cmpf one, %4, %5 : vector<16x128xf32>
    %cst_4 = arith.constant 9.000000e+00 : f32
    %cst_5 = arith.constant 1.000000e+00 : f32
    %7 = vector.broadcast %cst_4 : f32 to vector<16x128xf32>
    %8 = vector.broadcast %cst_5 : f32 to vector<16x128xf32>
    %9 = arith.select %6, %7, %8 : vector<16x128xi1>, vector<16x128xf32>
    %10 = arith.subf %3, %4 : vector<16x128xf32>
    %11 = arith.mulf %9, %10 : vector<16x128xf32>
    %12 = arith.mulf %11, %10 : vector<16x128xf32>
    %c0_6 = arith.constant 0 : index
    %c0_7 = arith.constant 0 : index
    %13 = vector.load %arg4[%c0_6, %c0_7] : memref<8x128xf32, #tpu.memory_space<vmem>>, vector<8x128xf32>
    %14 = vector.shape_cast %12 : vector<16x128xf32> to vector<2x8x128xf32>
    %cst_8 = arith.constant dense<0.000000e+00> : vector<8x128xf32>
    %15 = vector.multi_reduction <add>, %14, %cst_8 [0] : vector<2x8x128xf32> to vector<8x128xf32>
    %16 = arith.addf %13, %15 : vector<8x128xf32>
    %c0_9 = arith.constant 0 : index
    %c0_10 = arith.constant 0 : index
    %17 = vector.load %arg4[%c0_9, %c0_10] : memref<8x128xf32, #tpu.memory_space<vmem>>, vector<8x128xf32>
    tpu.vector_store %arg4[%c0_9, %c0_10], %16 {strides = array<i32>} : memref<8x128xf32, #tpu.memory_space<vmem>>, vector<8x128xf32>,
    return
  }
  func.func @transform_0(%arg0: i32, %arg1: i32) -> (i32, i32) {
    %c1_i32 = arith.constant 1 : i32
    %0 = arith.muli %arg0, %c1_i32 : i32
    %1 = arith.addi %0, %arg1 : i32
    %c0_i32 = arith.constant 0 : i32
    %c0_i32_0 = arith.constant 0 : i32
    return %1, %c0_i32 : i32, i32
  }
  func.func @transform_1(%arg0: i32, %arg1: i32) -> (i32, i32) {
    %c1_i32 = arith.constant 1 : i32
    %0 = arith.muli %arg0, %c1_i32 : i32
    %1 = arith.addi %0, %arg1 : i32
    %c0_i32 = arith.constant 0 : i32
    %c0_i32_0 = arith.constant 0 : i32
    return %1, %c0_i32 : i32, i32
  }
  func.func @transform_2(%arg0: i32, %arg1: i32) -> (i32, i32) {
    %c0_i32 = arith.constant 0 : i32
    %c0_i32_0 = arith.constant 0 : i32
    return %arg0, %c0_i32 : i32, i32
  }
}

</mosaic_0001>

<bundles_post_ra>
// kernel: tpu_custom_call.1
= control target key start
LH: loop header
LB: loop body
LE: loop exit
PB: predicated region body
PF: predicated region fallthrough
CT: control target
= control target key end

     0   :  { %7 = vsyncpa [#allocation3], 0  ;;  %s212_s0 = inlined_call_operand.hbm [shape: f32[16,128], index: 0, kind: input, shape index: {}]   ;;  %s213_s1 = inlined_call_operand.hbm [shape: f32[16,128], index: 1, kind: input, shape index: {}]   ;;  %s214_s2 = inlined_call_operand.hbm [shape: f32[8,128], index: 2, kind: output, shape index: {}]  }
   0x1   :  { %8 = vsyncpa [#allocation6], 0 }
   0x2   :  { %9 = vsyncpa [#allocation4], 0  ;;  %s18_s11 = sshll.u32 %s212_s0, 4  ;;  %s182_s12 = smov [#allocation2]   ;;  %s19_s11 = int_to_ptr.hbm [resolvable:$true] %s18_s11 }
   0x3   :  { %s20_s13 = sshll.u32 %s182_s12, 4  ;;  %s35_s16 = sshll.u32 %s213_s1, 4  ;;  %s21_s13 = int_to_ptr.vmem [resolvable:$true] %s20_s13  ;;  %s36_s16 = int_to_ptr.hbm [resolvable:$true] %s35_s16 }
   0x4   :  { %s183_s17 = smov 128   ;;  %s184_s18 = smov 8  }
   0x5   :  { %26 = dma.hbm_to_vmem [thread:$0]  %s19_s11, 256, %s21_s13, [#allocation3], %s183_s17, %s183_s17, %s184_s18  }
   0x6   :  { %s185_s19 = smov [#allocation5]  }
   0x7   :  { %s37_s20 = sshll.u32 %s185_s19, 4  ;;  %s38_s20 = int_to_ptr.vmem [resolvable:$true] %s37_s20 }
   0x8   :  { %43 = dma.hbm_to_vmem [thread:$0]  %s36_s16, 256, %s38_s20, [#allocation6], %s183_s17, %s183_s17, %s184_s18  }
   0x9   :  { %176 = dma.done.wait [#allocation3], 256  }
   0xa   :  { %177 = vsyncadd [#allocation3], 4294967040 }
   0xb   :  { %178 = dma.done.wait [#allocation6], 256  }
   0xc   :  { %179 = vsyncadd [#allocation6], 4294967040  ;;  %v61_v0 = vld [vmem:[#allocation2] sm:$0xff]  ;;  %v62_v1 = vld [vmem:[#allocation2 + $0x8] sm:$0xff]  ;;  %v186_v5 = vmov 1.0   ;;  %s187_s0 = smov [#allocation7]  }
   0xd   :  { %v63_v2 = vld [vmem:[#allocation5] sm:$0xff]  ;;  %v64_v3 = vld [vmem:[#allocation5 + $0x8] sm:$0xff]  ;;  %s84_s1 = sshll.u32 %s187_s0, 4  ;;  %s86_s23 = sshll.u32 %s214_s2, 4  ;;  %s85_s1 = int_to_ptr.vmem [resolvable:$true] %s84_s1  ;;  %s87_s23 = int_to_ptr.hbm [resolvable:$true] %s86_s23 }
   0xe   :  { %vm65_vm0 = vcmp.ne.f32.partialorder %v63_v2, 0.0  ;;  %v69_v4 = vsub.f32 %v61_v0, %v63_v2  ;;  %vm66_vm1 = vcmp.ne.f32.partialorder %v64_v3, 0.0  ;;  %v70_v7 = vsub.f32 %v62_v1, %v64_v3 }
   0xf   :  { %v67_v6 = vsel %vm65_vm0, 9.0, %v186_v5  ;;  %v68_v8 = vsel %vm66_vm1, 9.0, %v186_v5 }
  0x10   :  { %v71_v9 = vmul.f32 %v69_v4, %v67_v6  ;;  %v72_v10 = vmul.f32 %v70_v7, %v68_v8 }
  0x12   :  { %v73_v11 = vmul.f32 %v71_v9, %v69_v4  ;;  %v74_v12 = vmul.f32 %v72_v10, %v70_v7 }
  0x14   :  { %v76_v13 = vadd.f32 %v74_v12, %v73_v11 }
  0x16   :  { %78 = vst [vmem:[#allocation7] sm:$0xff] %v76_v13 }
  0x17   :  { %89 = dma.vmem_to_hbm [thread:$0]  %s85_s1, 128, %s87_s23, [#allocation4]  }
  0x18   :  { %180 = dma.done.wait [#allocation4], 128  }
  0x19   :  { %181 = vsyncadd [#allocation4], 4294967168 }
  0x1a   :  { %94 = vsyncpa [#allocation3], 1 }
  0x1b   :  { %95 = vsyncpa [#allocation6], 1 }
  0x1c   :  { %96 = vsyncpa [#allocation4], 1 }

</bundles_post_ra>
